<compile_context>
chip_gen: v5e
topology: v5e:2x2
jax: 0.10.0
libtpu: 0.0.40
codegen_flags: <defaults>
</compile_context>

<pallas_src>
import jax
import jax.numpy as jnp
from jax.experimental import pallas as pl
from jax.experimental.pallas import tpu as pltpu


def _l1_sum_kernel(a_ref, b_ref, out_ref, acc_ref):
    """Accumulate sum(|a - b|) over the D tiles of one parallel chunk.

    a_ref, b_ref: (B, TD) input tiles (native dtype, auto double-buffered).
    out_ref:      (1, 8, 128) f32 block; the chunk's partial sum, broadcast.
    acc_ref:      (B, TD) f32 VMEM scratch, persistent across the grid.
    """
    k = pl.program_id(1)

    @pl.when(k == 0)
    def _init():
        acc_ref[...] = jnp.zeros_like(acc_ref)

    # Loads stay in the native dtype; only the vreg math is promoted to f32.
    a = a_ref[...].astype(jnp.float32)
    b = b_ref[...].astype(jnp.float32)
    acc_ref[...] += jnp.abs(a - b)  # pure VALU adds in the hot loop

    @pl.when(k == pl.num_programs(1) - 1)
    def _finalize():
        total = jnp.sum(acc_ref[...])  # single cross-lane (XLU) reduce per chunk
        out_ref[...] = jnp.full(out_ref.shape, total, dtype=jnp.float32)


def _l1_sum_pallas(a, b, *, lane_tile=512):
    """sum(|a - b|) over all elements via a D-tiled, pipelined Pallas kernel."""
    assert a.shape == b.shape, (a.shape, b.shape)
    n = a.size
    B = a.shape[0] if a.ndim > 1 else 1
    D = n // B
    a2 = a.reshape(B, D)
    b2 = b.reshape(B, D)

    # Lane-tile budget: 2 inputs * 2 pipeline buffers * B * TD * itemsize kept
    # well under the smallest scoped-VMEM default (v7x: ~32 MiB) -> cap at 8 MiB.
    itemsize = max(jnp.dtype(a.dtype).itemsize, jnp.dtype(b.dtype).itemsize)
    budget_bytes = 8 * 1024 * 1024
    max_td = max(128, (budget_bytes // (4 * B * itemsize)) // 128 * 128)
    td = min(lane_tile, max_td)
    td = min(td, ((D + 127) // 128) * 128)  # don't exceed (lane-aligned) D
    td = max(td, 128)

    num_tiles = -(-D // td)  # cdiv
    d_pad = num_tiles * td
    if d_pad != D:
        # Zero padding: |0 - 0| = 0, does not perturb the sum.
        a2 = jnp.pad(a2, ((0, 0), (0, d_pad - D)))
        b2 = jnp.pad(b2, ((0, 0), (0, d_pad - D)))

    # Split the reduction tiles into P independent chunks so the leading
    # "parallel" grid axis can be sharded across TensorCores (v7x has 2 TCs).
    p = 2 if (num_tiles % 2 == 0 and num_tiles >= 2) else 1
    kk = num_tiles // p

    cost = pl.CostEstimate(
        flops=2 * B * d_pad,               # sub + abs per element
        transcendentals=0,
        bytes_accessed=2 * B * d_pad * itemsize,
    )

    partials = pl.pallas_call(
        _l1_sum_kernel,
        out_shape=jax.ShapeDtypeStruct((p, 8, 128), jnp.float32),
        grid_spec=pltpu.PrefetchScalarGridSpec(
            num_scalar_prefetch=0,
            grid=(p, kk),
            in_specs=[
                pl.BlockSpec((B, td), lambda pi, ki: (0, pi * kk + ki)),
                pl.BlockSpec((B, td), lambda pi, ki: (0, pi * kk + ki)),
            ],
            out_specs=pl.BlockSpec((1, 8, 128), lambda pi, ki: (pi, 0, 0)),
            scratch_shapes=[pltpu.VMEM((B, td), jnp.float32)],
        ),
        compiler_params=pltpu.CompilerParams(
            dimension_semantics=("parallel", "arbitrary")),
        cost_estimate=cost,
    )(a2, b2)

    return jnp.sum(partials[:, 0, 0])


def feature_matching_loss(fake_features, real_features):
    """JAX/Pallas equivalent of FeatureMatchingLoss.forward.

    fake_features / real_features: list (per discriminator) of lists of arrays.
    """
    num_d = len(fake_features)
    dis_weight = 1.0 / num_d
    loss = jnp.zeros((), jnp.float32)
    for i in range(num_d):
        for j in range(len(fake_features[i])):
            fake = fake_features[i][j]
            real = jax.lax.stop_gradient(real_features[i][j])  # .detach()
            n = fake.size
            loss = loss + dis_weight * (_l1_sum_pallas(fake, real) / n)
    # loss tensor dtype follows fake_features[0][0] (torch's new_tensor(0)).
    return loss.astype(fake_features[0][0].dtype)


def _reference_loss(fake_features, real_features):
    num_d = len(fake_features)
    w = 1.0 / num_d
    loss = jnp.zeros((), jnp.float32)
    for i in range(num_d):
        for j in range(len(fake_features[i])):
            diff = (fake_features[i][j].astype(jnp.float32)
                    - real_features[i][j].astype(jnp.float32))
            loss = loss + w * jnp.mean(jnp.abs(diff))
    return loss


if __name__ == "__main__":
    key = jax.random.PRNGKey(0)

    # Two "discriminators", each producing two small NCHW feature maps.
    # The (2, 3, 15, 15) map exercises the lane-padding path (D not % 128).
    shapes = [
        [(2, 4, 16, 16), (2, 8, 8, 8)],
        [(2, 4, 16, 16), (2, 3, 15, 15)],
    ]
    fake_features, real_features = [], []
    for disc_shapes in shapes:
        fd, rd = [], []
        for s in disc_shapes:
            key, k1, k2 = jax.random.split(key, 3)
            fd.append(jax.random.normal(k1, s, dtype=jnp.float32))
            rd.append(jax.random.normal(k2, s, dtype=jnp.float32))
        fake_features.append(fd)
        real_features.append(rd)

    loss = feature_matching_loss(fake_features, real_features)
    loss = jax.block_until_ready(loss)

    ref = _reference_loss(fake_features, real_features)
    assert jnp.allclose(loss, ref, atol=1e-5, rtol=1e-5), (loss, ref)

    print("KERNEL_OK")
</pallas_src>

<mosaic_0001>
module attributes {stable_mosaic.version = 11 : i64} {
  func.func @_l1_sum_kernel(%arg0: i32, %arg1: i32, %arg2: memref<2x512xf32, #tpu.memory_space<vmem>>, %arg3: memref<2x512xf32, #tpu.memory_space<vmem>>, %arg4: memref<1x8x128xf32, #tpu.memory_space<vmem>>, %arg5: memref<2x512xf32, #tpu.memory_space<vmem>>) attributes {dimension_semantics = [#tpu.dimension_semantics<parallel>, #tpu.dimension_semantics<arbitrary>], iteration_bounds = array<i64: 2, 1>, scalar_prefetch = 0 : i64, scratch_operands = 1 : i64, tpu.core_type = #tpu.core_type<tc>, window_params = [{transform_indices = @transform_0, window_bounds = array<i64: 2, 512>}, {transform_indices = @transform_1, window_bounds = array<i64: 2, 512>}, {transform_indices = @transform_2, window_bounds = array<i64: 1, 8, 128>}]} {
    %c0_i32 = arith.constant 0 : i32
    %0 = arith.cmpi eq, %arg1, %c0_i32 : i32
    %1 = arith.extui %0 : i1 to i32
    %c0_i32_0 = arith.constant 0 : i32
    %2 = arith.cmpi ne, %1, %c0_i32_0 : i32
    scf.if %2 {
      %cst = arith.constant 0.000000e+00 : f32
      %13 = vector.broadcast %cst : f32 to vector<2x512xf32>
      %c0_10 = arith.constant 0 : index
      %c0_11 = arith.constant 0 : index
      %14 = vector.load %arg5[%c0_10, %c0_11] : memref<2x512xf32, #tpu.memory_space<vmem>>, vector<2x512xf32>
      tpu.vector_store %arg5[%c0_10, %c0_11], %13 {strides = array<i32>} : memref<2x512xf32, #tpu.memory_space<vmem>>, vector<2x512xf32>,
    } else {
    }
    %c0 = arith.constant 0 : index
    %c0_1 = arith.constant 0 : index
    %3 = vector.load %arg2[%c0, %c0_1] : memref<2x512xf32, #tpu.memory_space<vmem>>, vector<2x512xf32>
    %c0_2 = arith.constant 0 : index
    %c0_3 = arith.constant 0 : index
    %4 = vector.load %arg3[%c0_2, %c0_3] : memref<2x512xf32, #tpu.memory_space<vmem>>, vector<2x512xf32>
    %c0_4 = arith.constant 0 : index
    %c0_5 = arith.constant 0 : index
    %5 = vector.load %arg5[%c0_4, %c0_5] : memref<2x512xf32, #tpu.memory_space<vmem>>, vector<2x512xf32>
    %6 = arith.subf %3, %4 : vector<2x512xf32>
    %7 = math.absf %6 : vector<2x512xf32>
    %8 = arith.addf %5, %7 : vector<2x512xf32>
    %c0_6 = arith.constant 0 : index
    %c0_7 = arith.constant 0 : index
    %9 = vector.load %arg5[%c0_6, %c0_7] : memref<2x512xf32, #tpu.memory_space<vmem>>, vector<2x512xf32>
    tpu.vector_store %arg5[%c0_6, %c0_7], %8 {strides = array<i32>} : memref<2x512xf32, #tpu.memory_space<vmem>>, vector<2x512xf32>,
    %c0_i32_8 = arith.constant 0 : i32
    %10 = arith.cmpi eq, %arg1, %c0_i32_8 : i32
    %11 = arith.extui %10 : i1 to i32
    %c0_i32_9 = arith.constant 0 : i32
    %12 = arith.cmpi ne, %11, %c0_i32_9 : i32
    scf.if %12 {
      %c0_10 = arith.constant 0 : index
      %c0_11 = arith.constant 0 : index
      %13 = vector.load %arg5[%c0_10, %c0_11] : memref<2x512xf32, #tpu.memory_space<vmem>>, vector<2x512xf32>
      %14 = vector.shape_cast %13 : vector<2x512xf32> to vector<1x2x512xf32>
      %cst = arith.constant dense<0.000000e+00> : vector<1xf32>
      %15 = vector.multi_reduction <add>, %14, %cst [1, 2] : vector<1x2x512xf32> to vector<1xf32>
      %16 = vector.shape_cast %15 : vector<1xf32> to vector<1x1x1xf32>
      %17 = vector.extract %16[0, 0, 0] : f32 from vector<1x1x1xf32>
      %18 = vector.broadcast %17 : f32 to vector<1x8x128xf32>
      %c0_12 = arith.constant 0 : index
      %c0_13 = arith.constant 0 : index
      %c0_14 = arith.constant 0 : index
      %19 = vector.load %arg4[%c0_12, %c0_13, %c0_14] : memref<1x8x128xf32, #tpu.memory_space<vmem>>, vector<1x8x128xf32>
      tpu.vector_store %arg4[%c0_12, %c0_13, %c0_14], %18 {strides = array<i32>} : memref<1x8x128xf32, #tpu.memory_space<vmem>>, vector<1x8x128xf32>,
    } else {
    }
    return
  }
  func.func @transform_0(%arg0: i32, %arg1: i32) -> (i32, i32) {
    %c1_i32 = arith.constant 1 : i32
    %0 = arith.muli %arg0, %c1_i32 : i32
    %1 = arith.addi %0, %arg1 : i32
    %c0_i32 = arith.constant 0 : i32
    %c0_i32_0 = arith.constant 0 : i32
    return %c0_i32, %1 : i32, i32
  }
  func.func @transform_1(%arg0: i32, %arg1: i32) -> (i32, i32) {
    %c1_i32 = arith.constant 1 : i32
    %0 = arith.muli %arg0, %c1_i32 : i32
    %1 = arith.addi %0, %arg1 : i32
    %c0_i32 = arith.constant 0 : i32
    %c0_i32_0 = arith.constant 0 : i32
    return %c0_i32, %1 : i32, i32
  }
  func.func @transform_2(%arg0: i32, %arg1: i32) -> (i32, i32, i32) {
    %c0_i32 = arith.constant 0 : i32
    %c0_i32_0 = arith.constant 0 : i32
    %c0_i32_1 = arith.constant 0 : i32
    return %arg0, %c0_i32, %c0_i32_0 : i32, i32, i32
  }
}

</mosaic_0001>

<bundles_post_ra>
// kernel: tpu_custom_call.1
= control target key start
LH: loop header
LB: loop body
LE: loop exit
PB: predicated region body
PF: predicated region fallthrough
CT: control target
= control target key end

     0   :  { %7 = vsyncpa [#allocation4], 0  ;;  %s773_s0 = inlined_call_operand.hbm [shape: f32[2,1024], index: 0, kind: input, shape index: {}]   ;;  %s774_s1 = inlined_call_operand.hbm [shape: f32[2,1024], index: 1, kind: input, shape index: {}]   ;;  %s775_s2 = inlined_call_operand.hbm [shape: f32[2,8,128], index: 2, kind: output, shape index: {}]  }
   0x1   :  { %9 = vsyncpa [#allocation4 + $0x1], 0 }
   0x2   :  { %10 = vsyncpa [#allocation7], 0 }
   0x3   :  { %12 = vsyncpa [#allocation7 + $0x1], 0 }
   0x4   :  { %13 = vsyncpa [#allocation5], 0 }
   0x5   :  { %15 = vsyncpa [#allocation5 + $0x1], 0  ;;  %s640_s9 = smov 0   ;;  %s642_s10 = smov 0  }
   0x6   :  { %s644_s11 = smov 0   ;;  %s646_s12 = smov 0  }
   0x7   :  { %s648_s13 = smov 0   ;;  %s650_s14 = smov 0  }
   0x8 LB: > { %s388_s15 = sadd.s32 4294967295, %s623_s14   ;;  %s389_s16 = sadd.s32 4294967294, %s623_s14   ;;  %s623_s14 = sphi %s650_s14, %s21_s14   ;;  %s619_s13 = sphi %s648_s13, %s784_s13   ;;  %s615_s12 = sphi %s646_s12, %s783_s12   ;;  %s611_s11 = sphi %s644_s11, %s782_s11   ;;  %s607_s10 = sphi %s642_s10, %s781_s10   ;;  %s603_s9 = sphi %s640_s9, %s780_s9  }
   0x9   : > { %s33_s17 = sadd.s32 1, %s619_s13  ;;  %s42_s18 = sadd.s32 1, %s611_s11 }
   0xa   : > { %p35_p0 = scmp.ge.s32.totalorder %s33_s17, 2  ;;  %p49_p1 = scmp.ne.s32.totalorder %s611_s11, %s607_s10 }
   0xb   : > { %p50_p2 = scmp.eq.s32.totalorder %s623_s14, 0  ;;  %p55_p3 = scmp.ne.s32.totalorder %s607_s10, %s603_s9 }
   0xc   : > { %s786_s17 = smov (%p35_p0, %s33_s17), 0  ;;  %p56_p5 = scmp.eq.s32.totalorder %s388_s15, 0 }
   0xd   : > { %p681_p4 = por %p50_p2, %p49_p1  ;;  %s39_s20 = ssub.s32 %s619_s13, %s786_s17 }
   0xe   : > { %p107_p6 = scmp.eq.s32.totalorder %s388_s15, 1  ;;  %p40_p7 = scmp.eq.s32.totalorder %s39_s20, 0 }
   0xf   : > { %p687_p8 = por %p56_p5, %p55_p3  ;;  %p113_p10 = scmp.eq.s32.totalorder %s389_s16, 1 }
  0x10   : > { %p691_p9 = por %p107_p6, %p49_p1  ;;  %p391_p12 = scmp.ge.s32.totalorder %s623_s14, 2 }
  0x11   : > { %s696_s23 = scalar_select %p40_p7, %s611_s11, %s42_s18  }
  0x12   : > { %p698_p11 = por %p113_p10, %p55_p3  ;;  %p427_p13 = scmp.lt.s32.totalorder %s623_s14, 2 }
  0x13   : > { %s133_s25 = sand.u32 1, %s611_s11   ;;  %s406_s27 = sshll.u32 %s619_s13, 3 }
  0x14   : > { %s392_s26 = sshll.u32 %s133_s25, 3  ;;  %s143_s30 = scalar_lea.hbm %s773_s0, %s406_s27 }
  0x15   : > { %s137_s3 = scalar_lea.vmem [#allocation3], %s392_s26  ;;  %s145_s5 = sshll.u32 %s143_s30, 4  ;;  %s146_s5 = int_to_ptr.hbm [resolvable:$true] %s145_s5 }
  0x16   : > { %s147_s4 = sshll.u32 %s137_s3, 4  ;;  %p417_p0 = pnand %p427_p13, %p681_p4  ;;  %s148_s4 = int_to_ptr.vmem [resolvable:$true] %s147_s4 }
  0x17   : > { %p398_p1 = scmp.ge.s32.totalorder %s623_s14, 1  ;;  %p173_p2 = scmp.lt.s32.totalorder %s623_s14, 3 }
  0x18   : > { %s134_s6 = scalar_lea.sflag [#allocation4], %s133_s25  ;;  %s164_s15 = scalar_lea.hbm %s774_s1, %s406_s27 }
  0x19   : > { %419 = dma.hbm_to_vmem [thread:$0]  (!%p417_p0), %s146_s5, 128, %s148_s4, %s134_s6  }
  0x1a   : > { %p174_p3 = pnand %p398_p1, %p173_p2  ;;  %s158_s16 = scalar_lea.vmem [#allocation6], %s392_s26 }
  0x1b   : > { %s168_s18 = sshll.u32 %s158_s16, 4  ;;  %s166_s20 = sshll.u32 %s164_s15, 4  ;;  %s169_s18 = int_to_ptr.vmem [resolvable:$true] %s168_s18  ;;  %s167_s20 = int_to_ptr.hbm [resolvable:$true] %s166_s20 }
  0x1c   : > { %s155_s28 = scalar_lea.sflag [#allocation7], %s133_s25  ;;  %177 = sbr.rel (%p174_p3) target bundleno = 239 (0xef), region = 28 }
  0x1d   : > { %422 = dma.hbm_to_vmem [thread:$0]  (!%p417_p0), %s167_s20, 128, %s169_s18, %s155_s28  }
  0x1e   : > { %s717_s19 = sand.u32 (!%p174_p3), 1, %s607_s10  }
  0x1f   : > { %s720_s29 = sshll.u32 (!%p174_p3), %s717_s19, 3  ;;  %s180_s30 = scalar_lea.sflag (!%p174_p3), [#allocation4], %s717_s19 }
  0x20   : > { %s183_s3 = scalar_lea.vmem (!%p174_p3), [#allocation3], %s720_s29 }
  0x21   : > { %590 = dma.done.wait (%p687_p8), %s180_s30, 128  }
  0x22   : > { %592 = vsyncadd (%p687_p8), %s180_s30, 4294967168  ;;  %s190_s25 = scalar_lea.sflag [#allocation7], %s717_s19  ;;  %s193_s26 = scalar_lea.vmem [#allocation6], %s720_s29 }
  0x23   : > { %594 = dma.done.wait (%p687_p8), %s190_s25, 128  }
  0x24   : > { %596 = vsyncadd (%p687_p8), %s190_s25, 4294967168  ;;  %v229_v0 = vld [vmem:[%s183_s3] sm:$0xff]  ;;  %v230_v1 = vld [vmem:[%s193_s26] sm:$0xff]  ;;  %vm250_vm0 = vcmask 1041408   ;;  %s403_s21 = sshll.u32 %s615_s12, 3  ;;  %s219_s6 = scalar_lea.vmem [#allocation8], %s720_s29 }
  0x25   : > { %v232_v2 = vsub.f32 %v229_v0, %v230_v1  ;;  %s280_s5 = scalar_lea.hbm %s775_s2, %s403_s21  ;;  %s282_s7 = sshll.u32 %s219_s6, 4  ;;  %s283_s7 = int_to_ptr.vmem [resolvable:$true] %s282_s7 }
  0x26   : > { %s284_s8 = sshll.u32 %s280_s5, 4  ;;  %s270_s16 = scalar_lea.sflag [#allocation5], %s717_s19  ;;  %s285_s8 = int_to_ptr.hbm [resolvable:$true] %s284_s8 }
  0x27   : > { %v233_v3 = vand.u32 2147483647, %v232_v2  ;;  %s551_s18 = sshra.s32 %s285_s8, 4  ;;  %s557_s30 = scalar_lea.hbm %s775_s2, 16  ;;  %s552_s18 = int_to_ptr.hbm [resolvable:$true] %s551_s18 }
  0x28   : > { %s553_s20 = scalar_lea.hbm %s552_s18, 8  ;;  %p558_p7 = scmp.lt.s32.totalorder %s552_s18, %s775_s2 }
  0x29   : > { %241 = vst [vmem:[#allocation1] ss:$4 sm:$0xff] %v233_v3  ;;  %p554_p4 = scmp.ne.s32.totalorder %s552_s18, %s553_s20  ;;  %p559_p8 = scmp.lt.s32.totalorder %s557_s30, %s553_s20 }
  0x2b   : > { %p555_p5 = pnand %p554_p4, %p691_p9  ;;  %p560_p10 = por %p559_p8, %p558_p7 }
  0x2d   : > { %p556_p6 = pneg %p555_p5 }
  0x2f   : > { %p561_p13 = pnand %p560_p10, %p556_p6 }
  0x30   : > { %v242_v4 = vld.sshfl [vmem:[#allocation1] sm:$0xff pattern:$0x73625140]  ;;  %v243_v5 = vld.sshfl [vmem:[#allocation1 + $0x8] sm:$0xff pattern:$0x73625140] }
  0x31   : > { %v244_v6 = vld.sshfl [vmem:[#allocation1 + $0x10] sm:$0xff pattern:$0x73625140]  ;;  %v245_v7 = vld.sshfl [vmem:[#allocation1 + $0x18] sm:$0xff pattern:$0x73625140] }
  0x32   : > { %v251_v8 = vsel %vm250_vm0, %v242_v4, 0.0  ;;  %v252_v9 = vsel %vm250_vm0, %v243_v5, 0.0  ;;  %v254_v10 = vsel %vm250_vm0, %v244_v6, 0.0  ;;  %v256_v12 = vsel %vm250_vm0, %v245_v7, 0.0 }
  0x33   : > { %v253_v11 = vadd.f32 %v252_v9, %v251_v8 }
  0x35   : > { %v255_v13 = vadd.f32 %v254_v10, %v253_v11 }
  0x37   : > { %v257_v14 = vadd.f32 %v256_v12, %v255_v13 }
  0x39   : > { %258 = vadd.xlane.f32.xlu0 %v257_v14 }
  0xac   : > { %v259_v15 = vpop.xlane.xlu0 %258 }
  0xad   : > { %v260_v16 = vrot.slane %v259_v15, 4 }
  0xaf   : > { %v261_v17 = vadd.f32 %v260_v16, %v259_v15 }
  0xb1   : > { %v262_v18 = vrot.slane %v261_v17, 2 }
  0xb3   : > { %v263_v19 = vadd.f32 %v262_v18, %v261_v17 }
  0xb5   : > { %v264_v20 = vrot.slane %v263_v19, 1 }
  0xb7   : > { %v265_v21 = vadd.f32 %v264_v20, %v263_v19 }
  0xb9   : > { %408 = vpush %v265_v21 }
  0xea   : > { %s409_s15 = spop %408 }
  0xeb   : > { %v267_v22 = vstv %s409_s15 }
  0xec   : > { %268 = vst [vmem:[%s219_s6] sm:$0xff] %v267_v22 }
  0xed   : > { %564 = shalt.err (!%p561_p13)
}
  0xee   : > { %414 = dma.vmem_to_hbm [thread:$0]  (%p691_p9), %s283_s7, 128, %s285_s8, %s270_s16  }
  0xef PF: > { %s296_s19 = sand.u32 1, %s603_s9   ;;  %p424_p0 = pnand %p391_p12, %p698_p11 }
  0xf0   : > { %s297_s25 = scalar_lea.sflag [#allocation5], %s296_s19 }
  0xf1   : > { %p425_p1 = pneg %p424_p0 }
  0xf3   : > { %598 = dma.done.wait (%p425_p1), %s297_s25, 128  }
  0xf4   : > { %600 = vsyncadd (%p425_p1), %s297_s25, 4294967168  ;;  %s21_s14 = sadd.s32 1, %s623_s14   ;;  %s780_s9 = smov %s607_s10 }
  0xf5   : > { %p18_p2 = scmp.ge.s32.totalorder %s21_s14, 4   ;;  %s781_s10 = smov %s611_s11 }
  0xf6   : > { %s782_s11 = smov %s696_s23  ;;  %s783_s12 = smov %s619_s13 }
  0xf7   : > { %s784_s13 = smov %s786_s17  ;;  %20 = sbr.rel (!%p18_p2) target bundleno = 8 (0x8), region = 94 }
  0xfc   :  { %303 = vsyncpa [#allocation4], 1 }
  0xfd   :  { %305 = vsyncpa [#allocation4 + $0x1], 1 }
  0xfe   :  { %306 = vsyncpa [#allocation7], 1 }
  0xff   :  { %308 = vsyncpa [#allocation7 + $0x1], 1 }
 0x100   :  { %309 = vsyncpa [#allocation5], 1 }
 0x101   :  { %311 = vsyncpa [#allocation5 + $0x1], 1 }

</bundles_post_ra>
